<compile_context>
chip_gen: v5e
topology: v5e:2x2
jax: 0.10.0
libtpu: 0.0.40
codegen_flags: <defaults>
</compile_context>

<pallas_src>
import functools
import math

import jax
import jax.numpy as jnp
from jax import lax
from jax.experimental import pallas as pl
from jax.experimental.pallas import tpu as pltpu


# --------------------------------------------------------------------------
# Kernel
# --------------------------------------------------------------------------
def _geglu_kernel(x_ref, w_ref, b_ref, o_ref, acc_ref, *, use_tanh_gelu):
    k = pl.program_id(2)
    nk = pl.num_programs(2)

    @pl.when(k == 0)
    def _():
        # Fold the bias into the accumulator init (removes a finalize add).
        acc_ref[...] = jnp.broadcast_to(b_ref[...], acc_ref.shape)

    # Single fused MXU matmul: N = 2*tn (both GEGLU halves at once),
    # bf16 operands, f32 accumulation.
    partial = jnp.dot(x_ref[...], w_ref[...],
                      preferred_element_type=jnp.float32)

    @pl.when(k < nk - 1)
    def _():
        acc_ref[...] += partial

    @pl.when(k == nk - 1)
    def _():
        tn = o_ref.shape[-1]
        # Register epilogue: no accumulator store+reload on the last K step.
        h = acc_ref[...] + partial                 # f32, bias already folded in
        h1 = h[:, :tn]                             # split on a 128-lane boundary
        h2 = h[:, tn:]
        if use_tanh_gelu:
            # EUP-friendly tanh approximation (flagged: differs from torch default).
            gate = jax.nn.gelu(h2, approximate=True)
        else:
            # Exact (erf-based) GELU, matching torch.nn.functional.gelu default.
            gate = 0.5 * h2 * (1.0 + lax.erf(h2 * (1.0 / math.sqrt(2.0))))
        o_ref[...] = (h1 * gate).astype(o_ref.dtype)


# --------------------------------------------------------------------------
# Helpers
# --------------------------------------------------------------------------
def _round_up(x, n):
    return (x + n - 1) // n * n


def _pick_tile(total, candidates):
    for c in candidates:
        if total % c == 0:
            return c
    return candidates[-1]


# --------------------------------------------------------------------------
# Parameter prep (do ONCE at parameter-load time, not per forward call)
# --------------------------------------------------------------------------
def make_geglu_params(weight, bias, out_dim, *, compute_dtype=jnp.bfloat16):
    """weight: (2*out_dim, in_dim), bias: (2*out_dim,).  Returns fused params."""
    two_out, in_dim = weight.shape
    assert two_out == 2 * out_dim, "weight must be (2*out_dim, in_dim)"

    in_dim_p = _round_up(in_dim, 128)
    out_dim_p = _round_up(out_dim, 128)            # lane-dense output tiles
    tn = _pick_tile(out_dim_p, (512, 256, 128))    # N tile per GEGLU half
    tk = _pick_tile(in_dim_p, (512, 256, 128))     # K tile (reduction)
    n_tiles = out_dim_p // tn

    w1 = weight[:out_dim, :].T                     # (in_dim, out_dim)
    w2 = weight[out_dim:, :].T
    w1 = jnp.pad(w1, ((0, in_dim_p - in_dim), (0, out_dim_p - out_dim)))
    w2 = jnp.pad(w2, ((0, in_dim_p - in_dim), (0, out_dim_p - out_dim)))
    b1 = jnp.pad(bias[:out_dim], (0, out_dim_p - out_dim))
    b2 = jnp.pad(bias[out_dim:], (0, out_dim_p - out_dim))

    # Interleave the two halves per N-tile so each (tk, 2*tn) weight block
    # feeds ONE matmul whose output splits cleanly into h1 | h2.
    wf = jnp.concatenate(
        [w1.reshape(in_dim_p, n_tiles, tn), w2.reshape(in_dim_p, n_tiles, tn)],
        axis=-1).reshape(in_dim_p, n_tiles * 2 * tn).astype(compute_dtype)
    bf = jnp.concatenate(
        [b1.reshape(n_tiles, tn), b2.reshape(n_tiles, tn)],
        axis=-1).reshape(1, n_tiles * 2 * tn).astype(jnp.float32)

    return dict(wf=wf, bf=bf, in_dim=in_dim, out_dim=out_dim,
                in_dim_p=in_dim_p, out_dim_p=out_dim_p,
                tn=tn, tk=tk, n_tiles=n_tiles, compute_dtype=compute_dtype)


# --------------------------------------------------------------------------
# Forward call (hot path)
# --------------------------------------------------------------------------
def geglu_pallas(x, params, *, out_dtype=None, use_tanh_gelu=False):
    """x: (..., in_dim) -> (..., out_dim) using pre-fused params."""
    in_dim = params["in_dim"]
    out_dim = params["out_dim"]
    in_dim_p = params["in_dim_p"]
    out_dim_p = params["out_dim_p"]
    tn, tk, n_tiles = params["tn"], params["tk"], params["n_tiles"]
    compute_dtype = params["compute_dtype"]
    wf, bf = params["wf"], params["bf"]

    assert x.shape[-1] == in_dim
    lead_shape = x.shape[:-1]
    m = 1
    for d in lead_shape:
        m *= d
    x2d = x.reshape(m, in_dim)

    # ---- M tiling: pad to a 128 multiple and pick tm from divisors of m_p,
    # so padding waste is capped at <128 rows. Tiny m uses a full-extent tile
    # rounded to 16 (clean bf16 sublane packing).
    if m >= 128:
        m_p = _round_up(m, 128)
        tm = _pick_tile(m_p, (1024, 512, 256, 128))
    else:
        m_p = _round_up(m, 16)
        tm = m_p

    # v7x has 2 TensorCores: make sure the 'parallel' axes have >= 2 grid
    # points when possible by splitting the M tile (never the N tile, which
    # would invalidate the fused weight layout).
    while (m_p // tm) * n_tiles < 2 and tm >= 256:
        tm //= 2

    k_tiles = in_dim_p // tk
    grid = (m_p // tm, n_tiles, k_tiles)

    out_dtype = x.dtype if out_dtype is None else out_dtype
    out_isz = jnp.dtype(out_dtype).itemsize
    cdt_isz = jnp.dtype(compute_dtype).itemsize

    # ---- activation prep (pad only if needed) ---------------------------
    if m_p != m or in_dim_p != in_dim:
        xp = jnp.pad(x2d, ((0, m_p - m), (0, in_dim_p - in_dim)))
    else:
        xp = x2d
    xp = xp.astype(compute_dtype)

    # ---- VMEM budget from actual tile bytes (double-buffered in/out + acc)
    x_tile = tm * tk * cdt_isz
    w_tile = tk * 2 * tn * cdt_isz
    b_tile = 2 * tn * 4
    o_tile = tm * tn * out_isz
    acc_bytes = tm * 2 * tn * 4
    vmem_limit = 2 * (x_tile + w_tile + b_tile + o_tile) + acc_bytes
    vmem_limit = int(vmem_limit * 1.5) + (4 << 20)          # headroom
    vmem_limit = max(16 << 20, min(vmem_limit, 56 << 20))   # < v7x 64 MiB

    cost = pl.CostEstimate(
        flops=2 * m_p * (2 * out_dim_p) * in_dim_p,
        transcendentals=m_p * out_dim_p,
        bytes_accessed=(xp.size * xp.dtype.itemsize
                        + wf.size * wf.dtype.itemsize
                        + bf.size * bf.dtype.itemsize
                        + m_p * out_dim_p * out_isz),
    )

    kernel = functools.partial(_geglu_kernel, use_tanh_gelu=use_tanh_gelu)

    out2d = pl.pallas_call(
        kernel,
        out_shape=jax.ShapeDtypeStruct((m_p, out_dim_p), out_dtype),
        grid_spec=pltpu.PrefetchScalarGridSpec(
            num_scalar_prefetch=0,
            grid=grid,
            in_specs=[
                pl.BlockSpec((tm, tk), lambda i, j, k: (i, k)),       # x rows/K
                pl.BlockSpec((tk, 2 * tn), lambda i, j, k: (k, j)),   # fused W
                pl.BlockSpec((1, 2 * tn), lambda i, j, k: (0, j)),    # fused b
            ],
            out_specs=pl.BlockSpec((tm, tn), lambda i, j, k: (i, j)),
            scratch_shapes=[pltpu.VMEM((tm, 2 * tn), jnp.float32)],
        ),
        compiler_params=pltpu.CompilerParams(
            dimension_semantics=("parallel", "parallel", "arbitrary"),
            vmem_limit_bytes=vmem_limit,
        ),
        cost_estimate=cost,
    )(xp, wf, bf)

    # Skip the slice (a full extra HBM round trip) when there is no padding.
    if m_p == m and out_dim_p == out_dim:
        return out2d.reshape(*lead_shape, out_dim)
    return out2d[:m, :out_dim].reshape(*lead_shape, out_dim)


def geglu_pallas_raw(x, weight, bias, *, out_dim, compute_dtype=jnp.bfloat16,
                     **kwargs):
    """Convenience wrapper; prefer caching make_geglu_params() in real loops."""
    params = make_geglu_params(weight, bias, out_dim, compute_dtype=compute_dtype)
    return geglu_pallas(x, params, **kwargs)


# --------------------------------------------------------------------------
# Pure-JAX reference matching the PyTorch forward
# --------------------------------------------------------------------------
def geglu_reference(x, weight, bias, *, out_dim, approximate=False):
    x_proj = jnp.einsum("...k,nk->...n", x, weight) + bias
    x1 = x_proj[..., :out_dim]
    x2 = x_proj[..., out_dim:]
    if approximate:
        gate = jax.nn.gelu(x2, approximate=True)
    else:
        gate = 0.5 * x2 * (1.0 + lax.erf(x2 / jnp.sqrt(2.0).astype(x2.dtype)))
    return x1 * gate


# --------------------------------------------------------------------------
if __name__ == "__main__":
    key = jax.random.PRNGKey(0)

    # ---- small shapes consistent with the module ------------------------
    batch, seq, in_dim, out_dim = 2, 8, 32, 32
    kx, kw, kb, kx2, kw2, kb2 = jax.random.split(key, 6)

    x = jax.random.normal(kx, (batch, seq, in_dim), dtype=jnp.float32)
    bound = 1.0 / math.sqrt(in_dim)
    weight = jax.random.uniform(kw, (2 * out_dim, in_dim),
                                minval=-bound, maxval=bound, dtype=jnp.float32)
    bias = jax.random.uniform(kb, (2 * out_dim,),
                              minval=-bound, maxval=bound, dtype=jnp.float32)

    # Params fused once (as they would be at parameter-load time).
    params = make_geglu_params(weight, bias, out_dim)

    y = geglu_pallas(x, params)
    y = jax.block_until_ready(y)
    assert y.shape == (batch, seq, out_dim)

    # Tight check vs a reference using the same bf16-rounded matmul operands
    # (f32 accumulation) -- isolates kernel correctness from bf16 quantization.
    xq = x.astype(jnp.bfloat16).astype(jnp.float32)
    wq = weight.astype(jnp.bfloat16).astype(jnp.float32)
    y_ref_q = geglu_reference(xq, wq, bias, out_dim=out_dim)
    assert jnp.allclose(y, y_ref_q, atol=1e-3, rtol=1e-3), "mismatch vs bf16-rounded ref"

    # Loose sanity check vs the full-f32 reference (bf16 operand tolerance).
    y_ref = geglu_reference(x, weight, bias, out_dim=out_dim)
    assert jnp.allclose(y, y_ref, atol=5e-2, rtol=5e-2), "mismatch vs f32 reference"

    # Exercise optional flags: bf16 output and tanh-approx gate.
    y_bf16 = jax.block_until_ready(geglu_pallas(x, params, out_dtype=jnp.bfloat16))
    assert jnp.allclose(y_bf16.astype(jnp.float32), y_ref, atol=8e-2, rtol=8e-2)
    y_tanh = jax.block_until_ready(geglu_pallas(x, params, use_tanh_gelu=True))
    y_tanh_ref = geglu_reference(xq, wq, bias, out_dim=out_dim, approximate=True)
    assert jnp.allclose(y_tanh, y_tanh_ref, atol=2e-3, rtol=2e-3)

    # ---- a second, slightly larger case that exercises K-tiling and the
    # multi-M-tile / v7x split path (grid = (2, 1, 3)) ---------------------
    b2_, s2_, in2, out2 = 4, 64, 384, 128
    x2 = jax.random.normal(kx2, (b2_, s2_, in2), dtype=jnp.float32)
    bound2 = 1.0 / math.sqrt(in2)
    w2 = jax.random.uniform(kw2, (2 * out2, in2),
                            minval=-bound2, maxval=bound2, dtype=jnp.float32)
    b2v = jax.random.uniform(kb2, (2 * out2,),
                             minval=-bound2, maxval=bound2, dtype=jnp.float32)
    params2 = make_geglu_params(w2, b2v, out2)
    y2 = jax.block_until_ready(geglu_pallas(x2, params2))
    assert y2.shape == (b2_, s2_, out2)
    x2q = x2.astype(jnp.bfloat16).astype(jnp.float32)
    w2q = w2.astype(jnp.bfloat16).astype(jnp.float32)
    y2_ref_q = geglu_reference(x2q, w2q, b2v, out_dim=out2)
    assert jnp.allclose(y2, y2_ref_q, atol=2e-3, rtol=2e-3), "mismatch (large case)"

    print("KERNEL_OK")
</pallas_src>

<mosaic_0001>
module attributes {stable_mosaic.version = 11 : i64} {
  func.func @_geglu_kernel(%arg0: i32, %arg1: i32, %arg2: i32, %arg3: memref<16x128xbf16, #tpu.memory_space<vmem>>, %arg4: memref<128x256xbf16, #tpu.memory_space<vmem>>, %arg5: memref<1x256xf32, #tpu.memory_space<vmem>>, %arg6: memref<16x128xf32, #tpu.memory_space<vmem>>, %arg7: memref<16x256xf32, #tpu.memory_space<vmem>>) attributes {dimension_semantics = [#tpu.dimension_semantics<parallel>, #tpu.dimension_semantics<parallel>, #tpu.dimension_semantics<arbitrary>], iteration_bounds = array<i64: 1, 1, 1>, scalar_prefetch = 0 : i64, scratch_operands = 1 : i64, tpu.core_type = #tpu.core_type<tc>, window_params = [{transform_indices = @transform_0, window_bounds = array<i64: 16, 128>}, {transform_indices = @transform_1, window_bounds = array<i64: 128, 256>}, {transform_indices = @transform_2, window_bounds = array<i64: 1, 256>}, {transform_indices = @transform_3, window_bounds = array<i64: 16, 128>}]} {
    %c0_i32 = arith.constant 0 : i32
    %0 = arith.cmpi eq, %arg2, %c0_i32 : i32
    %1 = arith.extui %0 : i1 to i32
    %c0_i32_0 = arith.constant 0 : i32
    %2 = arith.cmpi ne, %1, %c0_i32_0 : i32
    scf.if %2 {
      %c0_8 = arith.constant 0 : index
      %c0_9 = arith.constant 0 : index
      %12 = vector.load %arg5[%c0_8, %c0_9] : memref<1x256xf32, #tpu.memory_space<vmem>>, vector<1x256xf32>
      %13 = vector.shape_cast %12 : vector<1x256xf32> to vector<1x256xf32>
      %14 = vector.broadcast %13 : vector<1x256xf32> to vector<16x256xf32>
      %c0_10 = arith.constant 0 : index
      %c0_11 = arith.constant 0 : index
      %15 = vector.load %arg7[%c0_10, %c0_11] : memref<16x256xf32, #tpu.memory_space<vmem>>, vector<16x256xf32>
      tpu.vector_store %arg7[%c0_10, %c0_11], %14 {strides = array<i32>} : memref<16x256xf32, #tpu.memory_space<vmem>>, vector<16x256xf32>,
    } else {
    }
    %c0 = arith.constant 0 : index
    %c0_1 = arith.constant 0 : index
    %3 = vector.load %arg3[%c0, %c0_1] : memref<16x128xbf16, #tpu.memory_space<vmem>>, vector<16x128xbf16>
    %c0_2 = arith.constant 0 : index
    %c0_3 = arith.constant 0 : index
    %4 = vector.load %arg4[%c0_2, %c0_3] : memref<128x256xbf16, #tpu.memory_space<vmem>>, vector<128x256xbf16>
    %cst = arith.constant dense<0.000000e+00> : vector<16x256xf32>
    %5 = tpu.matmul %3, %4, %cst {dimension_numbers = #tpu.dot_dimension_numbers<[1], [0], [0], [1], [0, 0, 1, 1], [], []>} : vector<16x128xbf16>, vector<128x256xbf16>, vector<16x256xf32> -> vector<16x256xf32>
    %c0_i32_4 = arith.constant 0 : i32
    %6 = arith.cmpi slt, %arg2, %c0_i32_4 : i32
    %7 = arith.extui %6 : i1 to i32
    %c0_i32_5 = arith.constant 0 : i32
    %8 = arith.cmpi ne, %7, %c0_i32_5 : i32
    scf.if %8 {
      %c0_8 = arith.constant 0 : index
      %c0_9 = arith.constant 0 : index
      %12 = vector.load %arg7[%c0_8, %c0_9] : memref<16x256xf32, #tpu.memory_space<vmem>>, vector<16x256xf32>
      %13 = arith.addf %12, %5 : vector<16x256xf32>
      %c0_10 = arith.constant 0 : index
      %c0_11 = arith.constant 0 : index
      %14 = vector.load %arg7[%c0_10, %c0_11] : memref<16x256xf32, #tpu.memory_space<vmem>>, vector<16x256xf32>
      tpu.vector_store %arg7[%c0_10, %c0_11], %13 {strides = array<i32>} : memref<16x256xf32, #tpu.memory_space<vmem>>, vector<16x256xf32>,
    } else {
    }
    %c0_i32_6 = arith.constant 0 : i32
    %9 = arith.cmpi eq, %arg2, %c0_i32_6 : i32
    %10 = arith.extui %9 : i1 to i32
    %c0_i32_7 = arith.constant 0 : i32
    %11 = arith.cmpi ne, %10, %c0_i32_7 : i32
    scf.if %11 {
      %c0_8 = arith.constant 0 : index
      %c0_9 = arith.constant 0 : index
      %12 = vector.load %arg7[%c0_8, %c0_9] : memref<16x256xf32, #tpu.memory_space<vmem>>, vector<16x256xf32>
      %13 = arith.addf %12, %5 : vector<16x256xf32>
      %14 = vector.extract_strided_slice %13 {offsets = [0, 0], sizes = [16, 128], strides = [1, 1]} : vector<16x256xf32> to vector<16x128xf32>
      %15 = vector.extract_strided_slice %13 {offsets = [0, 128], sizes = [16, 128], strides = [1, 1]} : vector<16x256xf32> to vector<16x128xf32>
      %cst_10 = arith.constant 5.000000e-01 : f32
      %16 = vector.broadcast %cst_10 : f32 to vector<16x128xf32>
      %17 = arith.mulf %16, %15 : vector<16x128xf32>
      %cst_11 = arith.constant 0.707106769 : f32
      %18 = vector.broadcast %cst_11 : f32 to vector<16x128xf32>
      %19 = arith.mulf %15, %18 : vector<16x128xf32>
      %20 = math.erf %19 : vector<16x128xf32>
      %cst_12 = arith.constant 1.000000e+00 : f32
      %21 = vector.broadcast %cst_12 : f32 to vector<16x128xf32>
      %22 = arith.addf %21, %20 : vector<16x128xf32>
      %23 = arith.mulf %17, %22 : vector<16x128xf32>
      %24 = arith.mulf %14, %23 : vector<16x128xf32>
      %c0_13 = arith.constant 0 : index
      %c0_14 = arith.constant 0 : index
      %25 = vector.load %arg6[%c0_13, %c0_14] : memref<16x128xf32, #tpu.memory_space<vmem>>, vector<16x128xf32>
      tpu.vector_store %arg6[%c0_13, %c0_14], %24 {strides = array<i32>} : memref<16x128xf32, #tpu.memory_space<vmem>>, vector<16x128xf32>,
    } else {
    }
    return
  }
  func.func @transform_0(%arg0: i32, %arg1: i32, %arg2: i32) -> (i32, i32) {
    %c0_i32 = arith.constant 0 : i32
    return %arg0, %arg2 : i32, i32
  }
  func.func @transform_1(%arg0: i32, %arg1: i32, %arg2: i32) -> (i32, i32) {
    %c0_i32 = arith.constant 0 : i32
    return %arg2, %arg1 : i32, i32
  }
  func.func @transform_2(%arg0: i32, %arg1: i32, %arg2: i32) -> (i32, i32) {
    %c0_i32 = arith.constant 0 : i32
    %c0_i32_0 = arith.constant 0 : i32
    return %c0_i32, %arg1 : i32, i32
  }
  func.func @transform_3(%arg0: i32, %arg1: i32, %arg2: i32) -> (i32, i32) {
    %c0_i32 = arith.constant 0 : i32
    return %arg0, %arg1 : i32, i32
  }
}

</mosaic_0001>

<bundles_post_ra>
// kernel: tpu_custom_call.1
= control target key start
LH: loop header
LB: loop body
LE: loop exit
PB: predicated region body
PF: predicated region fallthrough
CT: control target
= control target key end

     0   :  { %8 = vsyncpa [#allocation4], 0  ;;  %s609_s0 = inlined_call_operand.hbm [shape: bf16[16,128], index: 0, kind: input, shape index: {}]   ;;  %s610_s1 = inlined_call_operand.hbm [shape: bf16[128,256], index: 1, kind: input, shape index: {}]   ;;  %s611_s2 = inlined_call_operand.hbm [shape: f32[1,256], index: 2, kind: input, shape index: {}]   ;;  %s612_s3 = inlined_call_operand.hbm [shape: f32[16,128], index: 3, kind: output, shape index: {}]  }
   0x1   :  { %9 = vsyncpa [#allocation7], 0  ;;  %s28_s14 = sshll.u32 %s610_s1, 4  ;;  %s29_s14 = int_to_ptr.hbm [resolvable:$true] %s28_s14 }
   0x2   :  { %10 = vsyncpa [#allocation5], 0  ;;  %s546_s15 = smov [#allocation6]   ;;  %s15_s19 = sshll.u32 %s609_s0, 4  ;;  %s16_s19 = int_to_ptr.hbm [resolvable:$true] %s15_s19 }
   0x3   :  { %s30_s16 = sshll.u32 %s546_s15, 4  ;;  %s547_s20 = smov 128   ;;  %s31_s16 = int_to_ptr.vmem [resolvable:$true] %s30_s16 }
   0x4   :  { %s548_s21 = smov 8   ;;  %s549_s22 = smov [#allocation3]  }
   0x5   :  { %36 = dma.hbm_to_vmem [thread:$0]  %s29_s14, 2048, %s31_s16, [#allocation7], %s547_s20, %s547_s20, %s548_s21  }
   0x6   :  { %s17_s23 = sshll.u32 %s549_s22, 4  ;;  %s550_s1 = smov 64   ;;  %s18_s23 = int_to_ptr.vmem [resolvable:$true] %s17_s23 }
   0x7   :  { %s551_s24 = smov 4   ;;  %s42_s27 = sshll.u32 %s611_s2, 4  ;;  %s43_s27 = int_to_ptr.hbm [resolvable:$true] %s42_s27 }
   0x8   :  { %23 = dma.hbm_to_vmem [thread:$0]  %s16_s19, 128, %s18_s23, [#allocation4], %s550_s1, %s550_s1, %s551_s24  }
   0x9   :  { %s552_s28 = smov [#allocation8]  }
   0xa   :  { %s44_s0 = sshll.u32 %s552_s28, 4  ;;  %s45_s0 = int_to_ptr.vmem [resolvable:$true] %s44_s0 }
   0xb   :  { %47 = dma.hbm_to_vmem [thread:$0]  %s43_s27, 32, %s45_s0, [#allocation7]  }
   0xc   :  { %540 = dma.done.wait [#allocation4], 128  }
   0xd   :  { %541 = vsyncadd [#allocation4], 4294967168 }
   0xe   :  { %542 = dma.done.wait [#allocation7], 2080  }
   0xf   :  { %543 = vsyncadd [#allocation7], 4294965216  ;;  %v430_v0 = vld [vmem:[#allocation6 + $0x74] sm:$0xf]  ;;  %v409_v1 = vld [vmem:[#allocation6 + $0x78] sm:$0xf0] }
  0x10   :  { %v428_v2 = vld [vmem:[#allocation6 + $0x64] sm:$0xf]  ;;  %v412_v3 = vor.u32 %v430_v0, %v409_v1  ;;  %v401_v4 = vld [vmem:[#allocation6 + $0x68] sm:$0xf0]  ;;  %v426_v6 = vld [vmem:[#allocation6 + $0x54] sm:$0xf] }
  0x11   :  { %v404_v5 = vor.u32 %v428_v2, %v401_v4  ;;  %v393_v7 = vld [vmem:[#allocation6 + $0x58] sm:$0xf0]  ;;  %v407_v8 = vld [vmem:[#allocation6 + $0x70] sm:$0xf]  ;;  %v431_v9 = vld [vmem:[#allocation6 + $0x74] sm:$0xf0] }
  0x12   :  { %192 = vmatpush.bf16.msra.mxu1 %v412_v3  ;;  %v399_v10 = vld [vmem:[#allocation6 + $0x60] sm:$0xf]  ;;  %v429_v11 = vld [vmem:[#allocation6 + $0x64] sm:$0xf0]  ;;  %v396_v12 = vor.u32 %v426_v6, %v393_v7  ;;  %v408_v13 = vor.u32 %v431_v9, %v407_v8  ;;  %v424_v14 = vld [vmem:[#allocation6 + $0x44] sm:$0xf] }
  0x13   :  { %v385_v15 = vld [vmem:[#allocation6 + $0x48] sm:$0xf0]  ;;  %v400_v16 = vor.u32 %v429_v11, %v399_v10  ;;  %v391_v17 = vld [vmem:[#allocation6 + $0x50] sm:$0xf]  ;;  %v427_v18 = vld [vmem:[#allocation6 + $0x54] sm:$0xf0] }
  0x14   :  { %178 = vmatpush.bf16.msra.mxu0 %v408_v13  ;;  %v388_v19 = vor.u32 %v424_v14, %v385_v15  ;;  %v422_v20 = vld [vmem:[#allocation6 + $0x34] sm:$0xf]  ;;  %v377_v21 = vld [vmem:[#allocation6 + $0x38] sm:$0xf0]  ;;  %v392_v22 = vor.u32 %v427_v18, %v391_v17  ;;  %v383_v23 = vld [vmem:[#allocation6 + $0x40] sm:$0xf] }
  0x15   :  { %v425_v24 = vld [vmem:[#allocation6 + $0x44] sm:$0xf0]  ;;  %v380_v25 = vor.u32 %v422_v20, %v377_v21  ;;  %v420_v26 = vld [vmem:[#allocation6 + $0x24] sm:$0xf]  ;;  %v369_v27 = vld [vmem:[#allocation6 + $0x28] sm:$0xf0] }
  0x16   :  { %193 = vmatpush.bf16.msra.mxu1 %v404_v5  ;;  %v384_v28 = vor.u32 %v425_v24, %v383_v23  ;;  %v375_v29 = vld [vmem:[#allocation6 + $0x30] sm:$0xf]  ;;  %v423_v30 = vld [vmem:[#allocation6 + $0x34] sm:$0xf0]  ;;  %v372_v31 = vor.u32 %v420_v26, %v369_v27  ;;  %v418_v32 = vld [vmem:[#allocation6 + $0x14] sm:$0xf] }
  0x17   :  { %v361_v33 = vld [vmem:[#allocation6 + $0x18] sm:$0xf0]  ;;  %v376_v34 = vor.u32 %v423_v30, %v375_v29  ;;  %v367_v35 = vld [vmem:[#allocation6 + $0x20] sm:$0xf]  ;;  %v421_v36 = vld [vmem:[#allocation6 + $0x24] sm:$0xf0] }
  0x18   :  { %179 = vmatpush.bf16.msra.mxu0 %v400_v16  ;;  %v364_v37 = vor.u32 %v418_v32, %v361_v33  ;;  %v416_v38 = vld [vmem:[#allocation6 + $0x4] sm:$0xf]  ;;  %v353_v39 = vld [vmem:[#allocation6 + $0x8] sm:$0xf0]  ;;  %v368_v40 = vor.u32 %v421_v36, %v367_v35  ;;  %v359_v41 = vld [vmem:[#allocation6 + $0x10] sm:$0xf] }
  0x19   :  { %v419_v42 = vld [vmem:[#allocation6 + $0x14] sm:$0xf0]  ;;  %v356_v43 = vor.u32 %v416_v38, %v353_v39  ;;  %v351_v46 = vld [vmem:[#allocation6] sm:$0xf]  ;;  %v417_v47 = vld [vmem:[#allocation6 + $0x4] sm:$0xf0] }
  0x1a   :  { %194 = vmatpush.bf16.msra.mxu1 %v396_v12  ;;  %v360_v44 = vor.u32 %v419_v42, %v359_v41  ;;  %v415_v45 = vld [vmem:[#allocation3] sm:$0xff]  ;;  %v352_v48 = vor.u32 %v417_v47, %v351_v46  ;;  %v586_v49 = vld [vmem:[#allocation8] sm:$0x3]  ;;  %s553_s2 = smov [#allocation9]   ;;  %s331_s5 = sshll.u32 %s612_s3, 4  ;;  %s332_s5 = int_to_ptr.hbm [resolvable:$true] %s331_s5 }
  0x1b   :  { %v67_v50 = vperm.slane %v586_v49, 1  ;;  %s329_s29 = sshll.u32 %s553_s2, 4  ;;  %s330_s29 = int_to_ptr.vmem [resolvable:$true] %s329_s29 }
  0x1c   :  { %180 = vmatpush.bf16.msra.mxu0 %v392_v22 }
  0x1e   :  { %195 = vmatpush.bf16.msra.mxu1 %v388_v19 }
  0x20   :  { %181 = vmatpush.bf16.msra.mxu0 %v384_v28 }
  0x22   :  { %196 = vmatpush.bf16.msra.mxu1 %v380_v25 }
  0x24   :  { %182 = vmatpush.bf16.msra.mxu0 %v376_v34 }
  0x26   :  { %197 = vmatpush.bf16.msra.mxu1 %v372_v31 }
  0x28   :  { %183 = vmatpush.bf16.msra.mxu0 %v368_v40 }
  0x2a   :  { %198 = vmatpush.bf16.msra.mxu1 %v364_v37 }
  0x2c   :  { %184 = vmatpush.bf16.msra.mxu0 %v360_v44 }
  0x2e   :  { %199 = vmatpush.bf16.msra.mxu1 %v356_v43 }
  0x30   :  { %185 = vmatpush.bf16.msra.mxu0 %v352_v48 }
  0x31   :  { %200 = vmatmul.bf16.vlgmr.msra.gmra.mxu1 %v415_v45 }
  0x33   :  { %186 = vmatmul.bf16.vlgmr.msra.gmra.mxu0 %v415_v45 }
  0xae   :  { %v201_v51 = vpop.f32.mrf.mxu1 }
  0xaf   :  { %v589_v52 = vadd.f32 %v201_v51, %v67_v50  ;;  %v66_v51 = vperm.slane %v586_v49, 0 }
  0xb1   :  { %v235_v53 = vmul.f32 0.70710677, %v589_v52 }
  0xb3   :  { %v237_v54 = vmul.f32 %v235_v53, %v235_v53 }
  0xb5   :  { %v238_v55 = vmin.f32 %v237_v54, 16.0 }
  0xb6   :  { %v203_v56 = vpop.f32.mrf.mxu1 }
  0xb7   :  { %v239_v57 = vmul.f32 2.1237322e-06, %v238_v55  ;;  %v250_v58 = vmul.f32 3.8918573e-05, %v238_v55  ;;  %v592_v59 = vadd.f32 %v203_v56, %v67_v50  ;;  %v187_v56 = vpop.f32.mrf.mxu0 }
  0xb9   :  { %v240_v60 = vadd.f32 0.00028619796, %v239_v57  ;;  %v251_v61 = vadd.f32 0.001143296, %v250_v58  ;;  %v595_v62 = vmul.f32 0.70710677, %v592_v59 }
  0xbb   :  { %v241_v63 = vmul.f32 %v240_v60, %v238_v55  ;;  %v252_v0 = vmul.f32 %v251_v61, %v238_v55  ;;  %v277_v1 = vmul.f32 %v595_v62, %v595_v62 }
  0xbd   :  { %v253_v2 = vadd.f32 0.014752088, %v252_v0  ;;  %v242_v3 = vadd.f32 0.0036580483, %v241_v63  ;;  %v278_v4 = vmin.f32 %v277_v1, 16.0  ;;  %v233_v63 = vmul.f32 0.5, %v589_v52 }
  0xbe   :  { %v229_v0 = vadd.f32 %v187_v56, %v66_v51 }
  0xbf   :  { %v254_v5 = vmul.f32 %v253_v2, %v238_v55  ;;  %v279_v6 = vmul.f32 2.1237322e-06, %v278_v4  ;;  %v290_v7 = vmul.f32 3.8918573e-05, %v278_v4  ;;  %v243_v9 = vmul.f32 %v242_v3, %v238_v55 }
  0xc1   :  { %v255_v8 = vadd.f32 0.112945676, %v254_v5  ;;  %v280_v10 = vadd.f32 0.00028619796, %v279_v6  ;;  %v291_v11 = vadd.f32 0.001143296, %v290_v7 }
  0xc2   :  { %v244_v16 = vadd.f32 0.05243302, %v243_v9  ;;  %v189_v9 = vpop.f32.mrf.mxu0 }
  0xc3   :  { %v256_v12 = vmul.f32 %v255_v8, %v238_v55  ;;  %v281_v13 = vmul.f32 %v280_v10, %v278_v4  ;;  %v292_v14 = vmul.f32 %v291_v11, %v278_v4  ;;  %v234_v10 = vmul.f32 0.5, %v592_v59 }
  0xc4   :  { %v245_v22 = vmul.f32 %v244_v16, %v238_v55  ;;  %v231_v11 = vadd.f32 %v189_v9, %v66_v51 }
  0xc5   :  { %v257_v15 = vadd.f32 0.4994258, %v256_v12  ;;  %v293_v17 = vadd.f32 0.014752088, %v292_v14  ;;  %v282_v19 = vadd.f32 0.0036580483, %v281_v13 }
  0xc6   :  { %v246_v26 = vadd.f32 0.18741608, %v245_v22 }
  0xc7   :  { %v258_v18 = vmul.f32 %v257_v15, %v238_v55  ;;  %v294_v20 = vmul.f32 %v293_v17, %v278_v4  ;;  %v283_v24 = vmul.f32 %v282_v19, %v278_v4 }
  0xc8   :  { %v247_v31 = vmul.f32 %v246_v26, %v238_v55 }
  0xc9   :  { %v259_v21 = vadd.f32 1.0, %v258_v18  ;;  %v295_v23 = vadd.f32 0.112945676, %v294_v20  ;;  %v284_v28 = vadd.f32 0.05243302, %v283_v24 }
  0xca   :  { %v248_v37 = vadd.f32 1.1283791, %v247_v31 }
  0xcb   :  { %440 = vrcp.f32 %v259_v21  ;;  %v296_v25 = vmul.f32 %v295_v23, %v278_v4  ;;  %v285_v34 = vmul.f32 %v284_v28, %v278_v4  ;;  %v271_v36 = vand.u32 2147483648, %v259_v21 }
  0xcc   :  { %v269_v39 = vand.u32 2147483647, %v259_v21  ;;  %vm265_vm1 = vweird.f32 %v259_v21  ;;  %v249_v44 = vmul.f32 %v248_v37, %v235_v53 }
  0xcd   :  { %v297_v27 = vadd.f32 0.4994258, %v296_v25  ;;  %v286_v40 = vadd.f32 0.18741608, %v285_v34  ;;  %v272_v42 = vor.u32 1.1754944e-38, %v271_v36 }
  0xce   :  { %vm270_vm3 = vcmp.eq.f32.partialorder %v269_v39, 8.507059e+37 }
  0xcf   :  { %v298_v29 = vmul.f32 %v297_v27, %v278_v4  ;;  %v287_v47 = vmul.f32 %v286_v40, %v278_v4 }
  0xd1   :  { %v441_v30 = vpop.eup %440  ;;  %v299_v33 = vadd.f32 1.0, %v298_v29  ;;  %v288_v58 = vadd.f32 1.1283791, %v287_v47 }
  0xd2   :  { %v261_v32 = vmul.f32 %v441_v30, %v259_v21  ;;  %vm266_vm0 = vweird.f32 %v441_v30 }
  0xd3   :  { %442 = vrcp.f32 %v299_v33  ;;  %vm267_vm2 = vmor %vm265_vm1, %vm266_vm0  ;;  %v311_v55 = vand.u32 2147483648, %v299_v33  ;;  %v309_v61 = vand.u32 2147483647, %v299_v33  ;;  %vm305_vm5 = vweird.f32 %v299_v33 }
  0xd4   :  { %v262_v35 = vsub.f32 1.0, %v261_v32  ;;  %v289_v4 = vmul.f32 %v288_v58, %v595_v62 }
  0xd5   :  { %v312_v2 = vor.u32 1.1754944e-38, %v311_v55  ;;  %vm310_vm7 = vcmp.eq.f32.partialorder %v309_v61, 8.507059e+37 }
  0xd6   :  { %v263_v38 = vmul.f32 %v441_v30, %v262_v35 }
  0xd8   :  { %v264_v41 = vadd.f32 %v441_v30, %v263_v38 }
  0xd9   :  { %v443_v43 = vpop.eup %442 }
  0xda   :  { %v268_v45 = vsel %vm267_vm2, %v441_v30, %v264_v41  ;;  %v301_v48 = vmul.f32 %v443_v43, %v299_v33  ;;  %vm306_vm4 = vweird.f32 %v443_v43 }
  0xdb   :  { %v273_v46 = vsel %vm270_vm3, %v272_v42, %v268_v45  ;;  %vm307_vm6 = vmor %vm305_vm5, %vm306_vm4 }
  0xdc   :  { %v274_v50 = vmul.f32 %v273_v46, %v249_v44  ;;  %v302_v54 = vsub.f32 1.0, %v301_v48 }
  0xde   :  { %v413_v57 = vclamps-f32 %v274_v50, 1.0  ;;  %v303_v60 = vmul.f32 %v443_v43, %v302_v54 }
  0xe0   :  { %v317_v53 = vadd.f32 1.0, %v413_v57  ;;  %v304_v1 = vadd.f32 %v443_v43, %v303_v60 }
  0xe2   :  { %v319_v3 = vmul.f32 %v317_v53, %v233_v63  ;;  %v308_v49 = vsel %vm307_vm6, %v443_v43, %v304_v1 }
  0xe3   :  { %v313_v5 = vsel %vm310_vm7, %v312_v2, %v308_v49 }
  0xe4   :  { %v321_v6 = vmul.f32 %v319_v3, %v229_v0  ;;  %v314_v7 = vmul.f32 %v313_v5, %v289_v4 }
  0xe6   :  { %323 = vst [vmem:[#allocation9] sm:$0xff] %v321_v6  ;;  %v414_v8 = vclamps-f32 %v314_v7, 1.0 }
  0xe8   :  { %v318_v52 = vadd.f32 1.0, %v414_v8 }
  0xea   :  { %v320_v12 = vmul.f32 %v318_v52, %v234_v10 }
  0xec   :  { %v322_v62 = vmul.f32 %v320_v12, %v231_v11 }
  0xee   :  { %324 = vst [vmem:[#allocation9 + $0x8] sm:$0xff] %v322_v62 }
  0xef   :  { %337 = dma.vmem_to_hbm [thread:$0]  %s330_s29, 256, %s332_s5, [#allocation5], %s547_s20, %s547_s20, %s548_s21  }
  0xf0   :  { %544 = dma.done.wait [#allocation5], 256  }
  0xf1   :  { %545 = vsyncadd [#allocation5], 4294967040 }
  0xf2   :  { %342 = vsyncpa [#allocation4], 1 }
  0xf3   :  { %343 = vsyncpa [#allocation7], 1 }
  0xf4   :  { %344 = vsyncpa [#allocation5], 1 }

</bundles_post_ra>
